<compile_context>
chip_gen: v6e
topology: v6e:2x2x1
jax: 0.10.0
libtpu: 0.0.40
codegen_flags: <defaults>
</compile_context>

<pallas_src>
import math

import numpy as np
import jax
import jax.numpy as jnp
from jax import lax
from jax.experimental import pallas as pl
from jax.experimental.pallas import tpu as pltpu


def _round_up(a, b):
    return (a + b - 1) // b * b


def adaptive_avg_pool_3x3(y):
    """PyTorch AdaptiveAvgPool2d(3) semantics (start=floor(i*L/3), end=ceil((i+1)*L/3))."""
    _, _, H, W = y.shape
    rows = []
    for i in range(3):
        hs, he = (i * H) // 3, -((-(i + 1) * H) // 3)
        cols = []
        for j in range(3):
            ws, we = (j * W) // 3, -((-(j + 1) * W) // 3)
            cols.append(jnp.mean(y[:, :, hs:he, ws:we], axis=(2, 3)))
        rows.append(jnp.stack(cols, axis=-1))
    return jnp.stack(rows, axis=-2)          # (N, C, 3, 3)


def _make_dfn_kernel(W, G, Lo):
    Wp2 = W + 2

    def kernel(kperm_ref, u_ref, onehot_ref, ssum_ref, wstk_ref, bias_ref, out_ref):
        # kperm_ref : (1, xC*9, 9)   per-sample dynamic-kernel values (permuted per tap)
        # u_ref     : (1, xC*9, Lr)  unfold(x) laid out on the flat padded grid
        # onehot_ref: (9, Lr)        interior-masked one-hot of (h*W + w) % 9
        # ssum_ref  : (xC, xC*9)     group-sum selector (sum over the 9 taps of a channel)
        # wstk_ref  : (9, out_C, xC) fuse conv weights, one (out_C, xC) slab per tap
        # bias_ref  : (out_C, 1)     fuse conv bias
        # out_ref   : (1, out_C, Lo) output on the flat padded grid (interior valid)
        out_c = out_ref.shape[1]

        # per-pixel dynamic kernel map: one MXU matmul, zero outside the interior
        kmap = jnp.dot(kperm_ref[0], onehot_ref[...],
                       preferred_element_type=jnp.float32)            # (xC*9, Lr)

        # dynamic filtering: lane-dense elementwise product + group-sum on the MXU
        e = u_ref[0] * kmap                                            # (xC*9, Lr)
        result = jnp.dot(ssum_ref[...], e,
                         preferred_element_type=jnp.float32)           # (xC, Lr)

        # fuse Conv2d(xC, out_C, 3, padding=1): the zero border of `result`
        # provides the conv padding, so each tap is a plain shifted slice fed
        # to a small MXU matmul (accumulated in f32).
        wf_all = wstk_ref[...]                                         # (9, out_C, xC)
        acc = jnp.zeros((out_c, Lo), jnp.float32)
        for d in range(9):
            di, dj = d // 3, d % 3
            s = (di - 1) * Wp2 + (dj - 1)
            y = result[:, G + s:G + s + Lo]                            # (xC, Lo)
            acc = acc + jnp.dot(wf_all[d], y,
                                preferred_element_type=jnp.float32)

        out_ref[0] = (acc + bias_ref[...]).astype(out_ref.dtype)       # one lane-dense store

    return kernel


def simple_dfn_pallas(x, y, params):
    Wg, bg, Wf, bf = params["Wg"], params["bg"], params["Wf"], params["bf"]
    N, xC, H, W = x.shape
    out_C = Wf.shape[0]
    HW = H * W
    Pp = (H + 2) * (W + 2)

    # flat-layout geometry (all lane widths 128-aligned)
    Lo = _round_up(Pp, 128)                     # output width (flat padded-grid index)
    G = _round_up(W + 3, 64)                    # left guard >= largest conv shift (W+3)
    Lr = _round_up(G + Lo + W + 3, 128)         # width of the stage-1 / result arrays

    # ---- kernel-generating branch (tiny glue): adaptive pool 3x3 + 1x1 conv ----
    pooled = adaptive_avg_pool_3x3(y)                                   # (N, yC, 3, 3)
    kern = jnp.einsum("oc,nchw->nohw", Wg, pooled,
                      precision=lax.Precision.HIGHEST) + bg[None, :, None, None]
    kflat = kern.reshape(N, xC * 9).astype(jnp.float32)                 # (N, xC*9)

    # kperm[n, c*9+j, m] = kernel[n, c, (j*H*W + m) % 9]   (static gather)
    idx = np.array([[c * 9 + (j * HW + m) % 9 for m in range(9)]
                    for c in range(xC) for j in range(9)], dtype=np.int32)
    kperm = kflat[:, idx]                                               # (N, xC*9, 9)

    # interior-masked one-hot of (h*W + w) % 9 on the flat padded grid (static)
    onehot_np = np.zeros((9, Lr), np.float32)
    for hp in range(1, H + 1):
        for wp in range(1, W + 1):
            m = ((hp - 1) * W + (wp - 1)) % 9
            onehot_np[m, G + hp * (W + 2) + wp] = 1.0
    onehot = jnp.asarray(onehot_np)

    # group-sum selector: result[c] = sum_j e[c*9 + j]
    ssum_np = np.zeros((xC, xC * 9), np.float32)
    for c in range(xC):
        ssum_np[c, c * 9:(c + 1) * 9] = 1.0
    ssum = jnp.asarray(ssum_np)

    # unfold(x) on the flat padded grid (layout plumbing):
    #   U[n, c*9 + ki*3 + kj, G + hp*(W+2) + wp] = x_pad2[n, c, hp+ki, wp+kj]
    x_pad2 = jnp.pad(x, ((0, 0), (0, 0), (2, 2), (2, 2))).astype(jnp.float32)
    taps = [x_pad2[:, :, ki:ki + H + 2, kj:kj + W + 2]
            for ki in range(3) for kj in range(3)]
    u = jnp.stack(taps, axis=2).reshape(N, xC * 9, Pp)
    u = jnp.pad(u, ((0, 0), (0, 0), (G, Lr - G - Pp)))                  # (N, xC*9, Lr)

    # fuse conv weights / bias: wstk[d, o, c] = Wf[o, c, di, dj], d = di*3 + dj
    wstk = Wf.transpose(2, 3, 0, 1).reshape(9, out_C, xC).astype(jnp.float32)
    bias = bf.reshape(out_C, 1).astype(jnp.float32)

    kernel = _make_dfn_kernel(W, G, Lo)
    out_flat = pl.pallas_call(
        kernel,
        out_shape=jax.ShapeDtypeStruct((N, out_C, Lo), jnp.float32),
        grid=(N,),
        in_specs=[
            pl.BlockSpec((1, xC * 9, 9), lambda n: (n, 0, 0)),      # kperm (per sample)
            pl.BlockSpec((1, xC * 9, Lr), lambda n: (n, 0, 0)),     # unfold(x) (per sample)
            pl.BlockSpec((9, Lr), lambda n: (0, 0)),                # one-hot (constant)
            pl.BlockSpec((xC, xC * 9), lambda n: (0, 0)),           # group-sum (constant)
            pl.BlockSpec((9, out_C, xC), lambda n: (0, 0, 0)),      # fuse weights (constant)
            pl.BlockSpec((out_C, 1), lambda n: (0, 0)),             # fuse bias (constant)
        ],
        out_specs=pl.BlockSpec((1, out_C, Lo), lambda n: (n, 0, 0)),
        compiler_params=pltpu.CompilerParams(
            dimension_semantics=("parallel",)),
    )(kperm, u, onehot, ssum, wstk, bias)

    # drop the flat/lane padding and the padded border -> (N, out_C, H, W)
    out = out_flat[:, :, :Pp].reshape(N, out_C, H + 2, W + 2)
    return out[:, :, 1:H + 1, 1:W + 1]


def simple_dfn_reference(x, y, params):
    """Pure-JAX reference, line-for-line faithful to the PyTorch forward."""
    Wg, bg, Wf, bf = params["Wg"], params["bg"], params["Wf"], params["bf"]
    N, xC, H, W = x.shape
    pooled = adaptive_avg_pool_3x3(y)
    kern = jnp.einsum("oc,nchw->nohw", Wg, pooled,
                      precision=lax.Precision.HIGHEST) + bg[None, :, None, None]
    kern = kern.reshape(N, xC, 9)
    HW = H * W
    kernel_rs = jnp.tile(kern, (1, 1, HW)).reshape(N, xC, 9, H, W)   # torch .repeat
    xp = jnp.pad(x, ((0, 0), (0, 0), (1, 1), (1, 1)))
    unfold_x = jnp.stack([xp[:, :, ki:ki + H, kj:kj + W]
                          for ki in range(3) for kj in range(3)], axis=2)
    result = (unfold_x * kernel_rs).sum(2)
    out = lax.conv_general_dilated(result, Wf, (1, 1), ((1, 1), (1, 1)),
                                   dimension_numbers=("NCHW", "OIHW", "NCHW"),
                                   precision=lax.Precision.HIGHEST)
    return out + bf[None, :, None, None]


if __name__ == "__main__":
    key = jax.random.PRNGKey(0)
    N, in_xC, in_yC, out_C = 2, 4, 6, 4
    H = W = 16
    yH = yW = 12

    k1, k2, k3, k4, k5, k6 = jax.random.split(key, 6)
    x = jax.random.normal(k1, (N, in_xC, H, W), jnp.float32)
    y = jax.random.normal(k2, (N, in_yC, yH, yW), jnp.float32)

    # deterministic parameter init (PyTorch-like uniform bounds)
    bg_bound = 1.0 / math.sqrt(in_yC)            # 1x1 conv: fan_in = in_yC
    Wg = jax.random.uniform(k3, (in_xC, in_yC), jnp.float32, -bg_bound, bg_bound)
    bg = jax.random.uniform(k4, (in_xC,), jnp.float32, -bg_bound, bg_bound)
    bf_bound = 1.0 / math.sqrt(in_xC * 9)        # 3x3 conv: fan_in = in_xC*9
    Wf = jax.random.uniform(k5, (out_C, in_xC, 3, 3), jnp.float32, -bf_bound, bf_bound)
    bf = jax.random.uniform(k6, (out_C,), jnp.float32, -bf_bound, bf_bound)
    params = dict(Wg=Wg, bg=bg, Wf=Wf, bf=bf)

    out = jax.jit(lambda xx, yy: simple_dfn_pallas(xx, yy, params))(x, y)
    out = jax.block_until_ready(out)

    ref = simple_dfn_reference(x, y, params)
    # Tolerance allows for MXU contraction-precision differences versus the
    # HIGHEST-precision XLA reference; structural errors are O(0.1-1) and would
    # still trip this check.
    np.testing.assert_allclose(np.asarray(out), np.asarray(ref), rtol=2e-2, atol=2e-2)
    print("KERNEL_OK")
</pallas_src>

<mosaic_0001>
module attributes {stable_mosaic.version = 11 : i64} {
  func.func @kernel(%arg0: i32, %arg1: memref<1x36x9xf32, #tpu.memory_space<vmem>>, %arg2: memref<1x36x512xf32, #tpu.memory_space<vmem>>, %arg3: memref<9x512xf32, #tpu.memory_space<vmem>>, %arg4: memref<4x36xf32, #tpu.memory_space<vmem>>, %arg5: memref<9x4x4xf32, #tpu.memory_space<vmem>>, %arg6: memref<4x1xf32, #tpu.memory_space<vmem>>, %arg7: memref<1x4x384xf32, #tpu.memory_space<vmem>>) attributes {dimension_semantics = [#tpu.dimension_semantics<parallel>], iteration_bounds = array<i64: 2>, scalar_prefetch = 0 : i64, scratch_operands = 0 : i64, tpu.core_type = #tpu.core_type<tc>, window_params = [{transform_indices = @transform_0, window_bounds = array<i64: 1, 36, 9>}, {transform_indices = @transform_1, window_bounds = array<i64: 1, 36, 512>}, {pipeline_mode = #tpu.pipeline_mode<synchronous>, transform_indices = @transform_2, window_bounds = array<i64: 9, 512>}, {pipeline_mode = #tpu.pipeline_mode<synchronous>, transform_indices = @transform_3, window_bounds = array<i64: 4, 36>}, {pipeline_mode = #tpu.pipeline_mode<synchronous>, transform_indices = @transform_4, window_bounds = array<i64: 9, 4, 4>}, {pipeline_mode = #tpu.pipeline_mode<synchronous>, transform_indices = @transform_5, window_bounds = array<i64: 4, 1>}, {transform_indices = @transform_6, window_bounds = array<i64: 1, 4, 384>}]} {
    %c0 = arith.constant 0 : index
    %c0_0 = arith.constant 0 : index
    %c0_1 = arith.constant 0 : index
    %0 = vector.load %arg1[%c0, %c0_0, %c0_1] : memref<1x36x9xf32, #tpu.memory_space<vmem>>, vector<1x36x9xf32>
    %1 = vector.shape_cast %0 : vector<1x36x9xf32> to vector<36x9xf32>
    %c0_2 = arith.constant 0 : index
    %c0_3 = arith.constant 0 : index
    %2 = vector.load %arg3[%c0_2, %c0_3] : memref<9x512xf32, #tpu.memory_space<vmem>>, vector<9x512xf32>
    %cst = arith.constant dense<0.000000e+00> : vector<36x512xf32>
    %3 = tpu.matmul %1, %2, %cst {dimension_numbers = #tpu.dot_dimension_numbers<[1], [0], [0], [1], [0, 0, 1, 1], [], []>} : vector<36x9xf32>, vector<9x512xf32>, vector<36x512xf32> -> vector<36x512xf32>
    %c0_4 = arith.constant 0 : index
    %c0_5 = arith.constant 0 : index
    %c0_6 = arith.constant 0 : index
    %4 = vector.load %arg2[%c0_4, %c0_5, %c0_6] : memref<1x36x512xf32, #tpu.memory_space<vmem>>, vector<1x36x512xf32>
    %5 = vector.shape_cast %4 : vector<1x36x512xf32> to vector<36x512xf32>
    %6 = arith.mulf %5, %3 : vector<36x512xf32>
    %c0_7 = arith.constant 0 : index
    %c0_8 = arith.constant 0 : index
    %7 = vector.load %arg4[%c0_7, %c0_8] : memref<4x36xf32, #tpu.memory_space<vmem>>, vector<4x36xf32>
    %cst_9 = arith.constant dense<0.000000e+00> : vector<4x512xf32>
    %8 = tpu.matmul %7, %6, %cst_9 {dimension_numbers = #tpu.dot_dimension_numbers<[1], [0], [0], [1], [0, 0, 1, 1], [], []>} : vector<4x36xf32>, vector<36x512xf32>, vector<4x512xf32> -> vector<4x512xf32>
    %c0_10 = arith.constant 0 : index
    %c0_11 = arith.constant 0 : index
    %c0_12 = arith.constant 0 : index
    %9 = vector.load %arg5[%c0_10, %c0_11, %c0_12] : memref<9x4x4xf32, #tpu.memory_space<vmem>>, vector<9x4x4xf32>
    %cst_13 = arith.constant 0.000000e+00 : f32
    %10 = vector.broadcast %cst_13 : f32 to vector<4x384xf32>
    %11 = vector.extract_strided_slice %8 {offsets = [0, 45], sizes = [4, 384], strides = [1, 1]} : vector<4x512xf32> to vector<4x384xf32>
    %12 = vector.extract_strided_slice %9 {offsets = [0, 0, 0], sizes = [1, 4, 4], strides = [1, 1, 1]} : vector<9x4x4xf32> to vector<1x4x4xf32>
    %13 = vector.shape_cast %12 : vector<1x4x4xf32> to vector<4x4xf32>
    %cst_14 = arith.constant dense<0.000000e+00> : vector<4x384xf32>
    %14 = tpu.matmul %13, %11, %cst_14 {dimension_numbers = #tpu.dot_dimension_numbers<[1], [0], [0], [1], [0, 0, 1, 1], [], []>} : vector<4x4xf32>, vector<4x384xf32>, vector<4x384xf32> -> vector<4x384xf32>
    %15 = arith.addf %10, %14 : vector<4x384xf32>
    %16 = vector.extract_strided_slice %8 {offsets = [0, 46], sizes = [4, 384], strides = [1, 1]} : vector<4x512xf32> to vector<4x384xf32>
    %17 = vector.extract_strided_slice %9 {offsets = [1, 0, 0], sizes = [1, 4, 4], strides = [1, 1, 1]} : vector<9x4x4xf32> to vector<1x4x4xf32>
    %18 = vector.shape_cast %17 : vector<1x4x4xf32> to vector<4x4xf32>
    %cst_15 = arith.constant dense<0.000000e+00> : vector<4x384xf32>
    %19 = tpu.matmul %18, %16, %cst_15 {dimension_numbers = #tpu.dot_dimension_numbers<[1], [0], [0], [1], [0, 0, 1, 1], [], []>} : vector<4x4xf32>, vector<4x384xf32>, vector<4x384xf32> -> vector<4x384xf32>
    %20 = arith.addf %15, %19 : vector<4x384xf32>
    %21 = vector.extract_strided_slice %8 {offsets = [0, 47], sizes = [4, 384], strides = [1, 1]} : vector<4x512xf32> to vector<4x384xf32>
    %22 = vector.extract_strided_slice %9 {offsets = [2, 0, 0], sizes = [1, 4, 4], strides = [1, 1, 1]} : vector<9x4x4xf32> to vector<1x4x4xf32>
    %23 = vector.shape_cast %22 : vector<1x4x4xf32> to vector<4x4xf32>
    %cst_16 = arith.constant dense<0.000000e+00> : vector<4x384xf32>
    %24 = tpu.matmul %23, %21, %cst_16 {dimension_numbers = #tpu.dot_dimension_numbers<[1], [0], [0], [1], [0, 0, 1, 1], [], []>} : vector<4x4xf32>, vector<4x384xf32>, vector<4x384xf32> -> vector<4x384xf32>
    %25 = arith.addf %20, %24 : vector<4x384xf32>
    %26 = vector.extract_strided_slice %8 {offsets = [0, 63], sizes = [4, 384], strides = [1, 1]} : vector<4x512xf32> to vector<4x384xf32>
    %27 = vector.extract_strided_slice %9 {offsets = [3, 0, 0], sizes = [1, 4, 4], strides = [1, 1, 1]} : vector<9x4x4xf32> to vector<1x4x4xf32>
    %28 = vector.shape_cast %27 : vector<1x4x4xf32> to vector<4x4xf32>
    %cst_17 = arith.constant dense<0.000000e+00> : vector<4x384xf32>
    %29 = tpu.matmul %28, %26, %cst_17 {dimension_numbers = #tpu.dot_dimension_numbers<[1], [0], [0], [1], [0, 0, 1, 1], [], []>} : vector<4x4xf32>, vector<4x384xf32>, vector<4x384xf32> -> vector<4x384xf32>
    %30 = arith.addf %25, %29 : vector<4x384xf32>
    %31 = vector.extract_strided_slice %8 {offsets = [0, 64], sizes = [4, 384], strides = [1, 1]} : vector<4x512xf32> to vector<4x384xf32>
    %32 = vector.extract_strided_slice %9 {offsets = [4, 0, 0], sizes = [1, 4, 4], strides = [1, 1, 1]} : vector<9x4x4xf32> to vector<1x4x4xf32>
    %33 = vector.shape_cast %32 : vector<1x4x4xf32> to vector<4x4xf32>
    %cst_18 = arith.constant dense<0.000000e+00> : vector<4x384xf32>
    %34 = tpu.matmul %33, %31, %cst_18 {dimension_numbers = #tpu.dot_dimension_numbers<[1], [0], [0], [1], [0, 0, 1, 1], [], []>} : vector<4x4xf32>, vector<4x384xf32>, vector<4x384xf32> -> vector<4x384xf32>
    %35 = arith.addf %30, %34 : vector<4x384xf32>
    %36 = vector.extract_strided_slice %8 {offsets = [0, 65], sizes = [4, 384], strides = [1, 1]} : vector<4x512xf32> to vector<4x384xf32>
    %37 = vector.extract_strided_slice %9 {offsets = [5, 0, 0], sizes = [1, 4, 4], strides = [1, 1, 1]} : vector<9x4x4xf32> to vector<1x4x4xf32>
    %38 = vector.shape_cast %37 : vector<1x4x4xf32> to vector<4x4xf32>
    %cst_19 = arith.constant dense<0.000000e+00> : vector<4x384xf32>
    %39 = tpu.matmul %38, %36, %cst_19 {dimension_numbers = #tpu.dot_dimension_numbers<[1], [0], [0], [1], [0, 0, 1, 1], [], []>} : vector<4x4xf32>, vector<4x384xf32>, vector<4x384xf32> -> vector<4x384xf32>
    %40 = arith.addf %35, %39 : vector<4x384xf32>
    %41 = vector.extract_strided_slice %8 {offsets = [0, 81], sizes = [4, 384], strides = [1, 1]} : vector<4x512xf32> to vector<4x384xf32>
    %42 = vector.extract_strided_slice %9 {offsets = [6, 0, 0], sizes = [1, 4, 4], strides = [1, 1, 1]} : vector<9x4x4xf32> to vector<1x4x4xf32>
    %43 = vector.shape_cast %42 : vector<1x4x4xf32> to vector<4x4xf32>
    %cst_20 = arith.constant dense<0.000000e+00> : vector<4x384xf32>
    %44 = tpu.matmul %43, %41, %cst_20 {dimension_numbers = #tpu.dot_dimension_numbers<[1], [0], [0], [1], [0, 0, 1, 1], [], []>} : vector<4x4xf32>, vector<4x384xf32>, vector<4x384xf32> -> vector<4x384xf32>
    %45 = arith.addf %40, %44 : vector<4x384xf32>
    %46 = vector.extract_strided_slice %8 {offsets = [0, 82], sizes = [4, 384], strides = [1, 1]} : vector<4x512xf32> to vector<4x384xf32>
    %47 = vector.extract_strided_slice %9 {offsets = [7, 0, 0], sizes = [1, 4, 4], strides = [1, 1, 1]} : vector<9x4x4xf32> to vector<1x4x4xf32>
    %48 = vector.shape_cast %47 : vector<1x4x4xf32> to vector<4x4xf32>
    %cst_21 = arith.constant dense<0.000000e+00> : vector<4x384xf32>
    %49 = tpu.matmul %48, %46, %cst_21 {dimension_numbers = #tpu.dot_dimension_numbers<[1], [0], [0], [1], [0, 0, 1, 1], [], []>} : vector<4x4xf32>, vector<4x384xf32>, vector<4x384xf32> -> vector<4x384xf32>
    %50 = arith.addf %45, %49 : vector<4x384xf32>
    %51 = vector.extract_strided_slice %8 {offsets = [0, 83], sizes = [4, 384], strides = [1, 1]} : vector<4x512xf32> to vector<4x384xf32>
    %52 = vector.extract_strided_slice %9 {offsets = [8, 0, 0], sizes = [1, 4, 4], strides = [1, 1, 1]} : vector<9x4x4xf32> to vector<1x4x4xf32>
    %53 = vector.shape_cast %52 : vector<1x4x4xf32> to vector<4x4xf32>
    %cst_22 = arith.constant dense<0.000000e+00> : vector<4x384xf32>
    %54 = tpu.matmul %53, %51, %cst_22 {dimension_numbers = #tpu.dot_dimension_numbers<[1], [0], [0], [1], [0, 0, 1, 1], [], []>} : vector<4x4xf32>, vector<4x384xf32>, vector<4x384xf32> -> vector<4x384xf32>
    %55 = arith.addf %50, %54 : vector<4x384xf32>
    %c0_23 = arith.constant 0 : index
    %c0_24 = arith.constant 0 : index
    %56 = vector.load %arg6[%c0_23, %c0_24] : memref<4x1xf32, #tpu.memory_space<vmem>>, vector<4x1xf32>
    %57 = vector.broadcast %56 : vector<4x1xf32> to vector<4x384xf32>
    %58 = arith.addf %55, %57 : vector<4x384xf32>
    %c0_25 = arith.constant 0 : index
    %c0_26 = arith.constant 0 : index
    %c0_27 = arith.constant 0 : index
    %59 = vector.load %arg7[%c0_25, %c0_26, %c0_27] : memref<1x4x384xf32, #tpu.memory_space<vmem>>, vector<1x4x384xf32>
    %60 = vector.shape_cast %59 : vector<1x4x384xf32> to vector<4x384xf32>
    %61 = vector.shape_cast %58 : vector<4x384xf32> to vector<1x4x384xf32>
    tpu.vector_store %arg7[%c0_25, %c0_26, %c0_27], %61 {strides = array<i32>} : memref<1x4x384xf32, #tpu.memory_space<vmem>>, vector<1x4x384xf32>,
    return
  }
  func.func @transform_0(%arg0: i32) -> (i32, i32, i32) {
    %c0_i32 = arith.constant 0 : i32
    %c0_i32_0 = arith.constant 0 : i32
    %c0_i32_1 = arith.constant 0 : i32
    return %arg0, %c0_i32, %c0_i32_0 : i32, i32, i32
  }
  func.func @transform_1(%arg0: i32) -> (i32, i32, i32) {
    %c0_i32 = arith.constant 0 : i32
    %c0_i32_0 = arith.constant 0 : i32
    %c0_i32_1 = arith.constant 0 : i32
    return %arg0, %c0_i32, %c0_i32_0 : i32, i32, i32
  }
  func.func @transform_2(%arg0: i32) -> (i32, i32) {
    %c0_i32 = arith.constant 0 : i32
    %c0_i32_0 = arith.constant 0 : i32
    %c0_i32_1 = arith.constant 0 : i32
    return %c0_i32, %c0_i32_0 : i32, i32
  }
  func.func @transform_3(%arg0: i32) -> (i32, i32) {
    %c0_i32 = arith.constant 0 : i32
    %c0_i32_0 = arith.constant 0 : i32
    %c0_i32_1 = arith.constant 0 : i32
    return %c0_i32, %c0_i32_0 : i32, i32
  }
  func.func @transform_4(%arg0: i32) -> (i32, i32, i32) {
    %c0_i32 = arith.constant 0 : i32
    %c0_i32_0 = arith.constant 0 : i32
    %c0_i32_1 = arith.constant 0 : i32
    %c0_i32_2 = arith.constant 0 : i32
    return %c0_i32, %c0_i32_0, %c0_i32_1 : i32, i32, i32
  }
  func.func @transform_5(%arg0: i32) -> (i32, i32) {
    %c0_i32 = arith.constant 0 : i32
    %c0_i32_0 = arith.constant 0 : i32
    %c0_i32_1 = arith.constant 0 : i32
    return %c0_i32, %c0_i32_0 : i32, i32
  }
  func.func @transform_6(%arg0: i32) -> (i32, i32, i32) {
    %c0_i32 = arith.constant 0 : i32
    %c0_i32_0 = arith.constant 0 : i32
    %c0_i32_1 = arith.constant 0 : i32
    return %arg0, %c0_i32, %c0_i32_0 : i32, i32, i32
  }
}

</mosaic_0001>

<bundles_post_ra>
// kernel: _lambda_.1
= control target key start
LH: loop header
LB: loop body
LE: loop exit
PB: predicated region body
PF: predicated region fallthrough
CT: control target
= control target key end

     0   :  { %s2496_s21 = smov 0   ;;  %s2752_s0 = inlined_call_operand.vmem [shape: f32[2,36,9], index: 0, kind: input, shape index: {}]   ;;  %s2753_s1 = inlined_call_operand.vmem [shape: f32[2,36,512], index: 1, kind: input, shape index: {}]   ;;  %s2754_s2 = inlined_call_operand.vmem [shape: f32[9,512], index: 2, kind: input, shape index: {}]   ;;  %s2755_s3 = inlined_call_operand.vmem [shape: f32[4,36], index: 3, kind: input, shape index: {}]   ;;  %s2756_s4 = inlined_call_operand.vmem [shape: f32[9,4,4], index: 4, kind: input, shape index: {}]   ;;  %s2757_s5 = inlined_call_operand.vmem [shape: f32[4,1], index: 5, kind: input, shape index: {}]   ;;  %s2758_s6 = inlined_call_operand.vmem [shape: f32[2,4,384], index: 6, kind: output, shape index: {}]  }
   0x1 LB: > { %s2279_s22 = sadd.s32 4294967295, %s2447_s21   ;;  %p2283_p0 = scmp.ge.s32.totalorder %s2447_s21, 1  ;;  %s2447_s21 = sphi %s2496_s21, %s16_s21  }
   0x2   : > { %p222_p1 = scmp.lt.s32.totalorder %s2447_s21, 3 }
   0x4   : > { %p223_p2 = pnand %p2283_p0, %p222_p1 }
   0x5   : > { %p257_p3 = scmp.lt.s32.totalorder (!%p223_p2), %s2279_s22, 1  ;;  %s2450_s27 = smov (!%p223_p2), 82  }
   0x6   : > { %226 = sbr.rel (%p223_p2) target bundleno = 821 (0x335), region = 44  ;;  %s2452_s28 = smov (!%p223_p2), 83  }
   0x7   : > { %s2453_s29 = smov (!%p223_p2), 81   ;;  %s2454_s30 = smov (!%p223_p2), 65  }
   0x8   : > { %s2455_s7 = smov (!%p223_p2), 64   ;;  %s2456_s8 = smov (!%p223_p2), 63  }
   0x9   : > { %s2457_s9 = smov (!%p223_p2), 47   ;;  %s2458_s10 = smov (!%p223_p2), 46  }
   0xa   : > { %s2460_s11 = smov (!%p223_p2), 45  }
   0xb   : > { %v282_v0 = vld [vmem:[%s2754_s2 + $0x28] sm:$0x1]  ;;  %vm301_vm0 = vcmask 1040384   ;;  %v284_v1 = vld [vmem:[%s2754_s2 + $0x38] sm:$0x1]  ;;  %v277_v6 = vld [vmem:[%s2754_s2] sm:$0xff] }
   0xc   : > { %v278_v2 = vld [vmem:[%s2754_s2 + $0x8] sm:$0xff]  ;;  %2287 = vmatprep.subr.msk.mxu0 %vm301_vm0, %v282_v0  ;;  %2294 = vmatprep.subr.msk.mxu1 %vm301_vm0, %v284_v1  ;;  %v281_v3 = vld [vmem:[%s2754_s2 + $0x20] sm:$0x1]  ;;  %v283_v4 = vld [vmem:[%s2754_s2 + $0x30] sm:$0x1]  ;;  %v2449_v8 = vmov 0.0  }
   0xd   : > { %v280_v5 = vld [vmem:[%s2754_s2 + $0x18] sm:$0xff]  ;;  %2288 = vmatpush1.msk.msra.mxu0 %vm301_vm0, %v281_v3  ;;  %2295 = vmatpush1.msk.msra.mxu1 %vm301_vm0, %v283_v4  ;;  %v279_v7 = vld [vmem:[%s2754_s2 + $0x10] sm:$0xff]  ;;  %s2760_s22 = smov (!%p257_p3, %s2279_s22), 1  ;;  %vm285_vm1 = vcmask 72704   ;;  %vm549_vm2 = vcmask 1043456   ;;  %vm545_vm3 = vcmask 293888  }
   0xe   : > { %344 = vmatprep.subr.mxu0 %v278_v2  ;;  %439 = vmatprep.subr.mxu1 %v280_v5  ;;  %s2417_s15 = smul.u32 40, %s2760_s22  ;;  %vm2451_vm4 = vmmov 0   ;;  %vm725_vm5 = vcmask 670720   ;;  %vm729_vm6 = vcmask 31744   ;;  %vm888_vm7 = vcmask 678912  }
   0xf   : > { %345 = vmatpush1.msra.mxu0 %v277_v6  ;;  %378 = vmatprep.mubr.f32.mxu0 %v2449_v8  ;;  %s2418_s19 = smul.u32 160, %s2760_s22  ;;  %vm1050_vm8 = vcmask 662528   ;;  %vm1215_vm9 = vcmask 531456   ;;  %vm1380_vm10 = vcmask 523264   ;;  %vm1545_vm11 = vcmask 515072  }
  0x10   : > { %440 = vmatpush1.msra.mxu1 %v279_v7  ;;  %473 = vmatprep.mubr.f32.mxu1 %v2449_v8  ;;  %s261_s18 = scalar_lea.vmem %s2752_s0, %s2417_s15  ;;  %vm1710_vm12 = vcmask 384000   ;;  %vm1875_vm13 = vcmask 375808   ;;  %vm2040_vm14 = vcmask 367616  }
  0x11   : > { %v272_v9 = vld [vmem:[%s261_s18] sm:$0xff]  ;;  %v273_v10 = vld [vmem:[%s261_s18 + $0x8] sm:$0xff]  ;;  %v274_v11 = vld [vmem:[%s261_s18 + $0x10] sm:$0xff]  ;;  %s2572_s24 = scalar_lea.vmem %s2753_s1, %s2418_s19 }
  0x12   : > { %2289 = vmatmul.mubr.msk.f32.vlgmr.msra.gmra.mxu0 %vm285_vm1, %v272_v9  ;;  %2296 = vmatmul.mubr.msk.f32.vlgmr.msra.gmra.mxu1 %vm285_vm1, %v272_v9  ;;  %v275_v12 = vld [vmem:[%s261_s18 + $0x18] sm:$0xff]  ;;  %v276_v13 = vld [vmem:[%s261_s18 + $0x20] sm:$0xf]  ;;  %v521_v33 = vld [vmem:[%s2572_s24 + $0x88] sm:$0xf] }
  0x13   : > { %384 = vmatprep.mubr.f32.mxu0 %v2449_v8  ;;  %479 = vmatprep.mubr.f32.mxu1 %v2449_v8  ;;  %v520_v30 = vld [vmem:[%s2572_s24 + $0x80] sm:$0xf]  ;;  %v523_v34 = vld [vmem:[%s2572_s24 + $0x98] sm:$0xf]  ;;  %v522_v35 = vld [vmem:[%s2572_s24 + $0x90] sm:$0xf] }
  0x14   : > { %v517_v36 = vld [vmem:[%s2572_s24 + $0x68] sm:$0xff]  ;;  %v519_v37 = vld [vmem:[%s2572_s24 + $0x78] sm:$0xff]  ;;  %v516_v41 = vld [vmem:[%s2572_s24 + $0x60] sm:$0xff] }
  0x15   : > { %v518_v42 = vld [vmem:[%s2572_s24 + $0x70] sm:$0xff]  ;;  %v513_v45 = vld [vmem:[%s2572_s24 + $0x48] sm:$0xff]  ;;  %v515_v46 = vld [vmem:[%s2572_s24 + $0x58] sm:$0xff] }
  0x16   : > { %2290 = vmatmul.mubr.msk.f32.gmra.mxu0 %vm285_vm1, %v273_v10  ;;  %2297 = vmatmul.mubr.msk.f32.gmra.mxu1 %vm285_vm1, %v273_v10  ;;  %v512_v48 = vld [vmem:[%s2572_s24 + $0x40] sm:$0xff]  ;;  %v514_v49 = vld [vmem:[%s2572_s24 + $0x50] sm:$0xff]  ;;  %v509_v52 = vld [vmem:[%s2572_s24 + $0x28] sm:$0xff] }
  0x17   : > { %390 = vmatprep.mubr.f32.mxu0 %v2449_v8  ;;  %485 = vmatprep.mubr.f32.mxu1 %v2449_v8  ;;  %v511_v53 = vld [vmem:[%s2572_s24 + $0x38] sm:$0xff]  ;;  %v508_v56 = vld [vmem:[%s2572_s24 + $0x20] sm:$0xff]  ;;  %v510_v57 = vld [vmem:[%s2572_s24 + $0x30] sm:$0xff] }
  0x18   : > { %v505_v60 = vld [vmem:[%s2572_s24 + $0x8] sm:$0xff]  ;;  %v507_v61 = vld [vmem:[%s2572_s24 + $0x18] sm:$0xff]  ;;  %v504_v0 = vld [vmem:[%s2572_s24] sm:$0xff] }
  0x19   : > { %v506_v1 = vld [vmem:[%s2572_s24 + $0x10] sm:$0xff] }
  0x1a   : > { %2291 = vmatmul.mubr.msk.f32.gmra.mxu0 %vm285_vm1, %v274_v11  ;;  %2298 = vmatmul.mubr.msk.f32.gmra.mxu1 %vm285_vm1, %v274_v11  ;;  %v544_v11 = vld [vmem:[%s2755_s3] sm:$0xf] }
  0x1b   : > { %396 = vmatprep.mubr.f32.mxu0 %v2449_v8  ;;  %491 = vmatprep.mubr.f32.mxu1 %v2449_v8 }
  0x1e   : > { %2292 = vmatmul.mubr.msk.f32.gmra.mxu0 %vm285_vm1, %v275_v12  ;;  %2299 = vmatmul.mubr.msk.f32.gmra.mxu1 %vm285_vm1, %v275_v12 }
  0x1f   : > { %402 = vmatprep.mubr.f32.mxu0 %v2449_v8  ;;  %497 = vmatprep.mubr.f32.mxu1 %v2449_v8 }
  0x22   : > { %2293 = vmatmul.mubr.msk.f32.gmra.mxu0 %vm285_vm1, %v276_v13  ;;  %2300 = vmatmul.mubr.msk.f32.gmra.mxu1 %vm285_vm1, %v276_v13 }
  0x23   : > { %626 = vmatprep.mubr.f32.mxu0 %v2449_v8  ;;  %697 = vmatprep.mubr.f32.mxu1 %v2449_v8 }
  0xd2   : > { %v2556_v14 = vpop.f32.mrf.mxu0  ;;  %v2558_v15 = vpop.f32.mrf.mxu1 }
  0xd3   : > { %v524_v9 = vmul.f32 %v504_v0, %v2556_v14  ;;  %v526_v10 = vmul.f32 %v506_v1, %v2558_v15  ;;  %v709_v0 = vld [vmem:[%s2756_s4 + $0x14] sm:$0xf] }
  0xd4   : > { %v2560_v16 = vpop.f32.mrf.mxu0  ;;  %v2562_v17 = vpop.f32.mrf.mxu1 }
  0xd5   : > { %v525_v6 = vmul.f32 %v505_v60, %v2560_v16  ;;  %v527_v7 = vmul.f32 %v507_v61, %v2562_v17  ;;  %v2459_v16 = vmov 0   ;;  %v2197_v17 = vld [vmem:[%s2757_s5] sm:$0xf] }
  0xd6   : > { %v2564_v18 = vpop.f32.mrf.mxu0  ;;  %v2566_v19 = vpop.f32.mrf.mxu1  ;;  %2440 = vset.pattern.permute.xlu0 %v2459_v16 }
  0xd7   : > { %v528_v4 = vmul.f32 %v508_v56, %v2564_v18  ;;  %v530_v5 = vmul.f32 %v510_v57, %v2566_v19 }
  0xd8   : > { %v388_v20 = vpop.f32.mrf.mxu0  ;;  %v483_v21 = vpop.f32.mrf.mxu1 }
  0xd9   : > { %v529_v2 = vmul.f32 %v509_v52, %v388_v20  ;;  %v531_v3 = vmul.f32 %v511_v53, %v483_v21 }
  0xda   : > { %v392_v22 = vpop.f32.mrf.mxu0  ;;  %v487_v23 = vpop.f32.mrf.mxu1 }
  0xdb   : > { %v532_v62 = vmul.f32 %v512_v48, %v392_v22  ;;  %v534_v63 = vmul.f32 %v514_v49, %v487_v23 }
  0xdc   : > { %v394_v24 = vpop.f32.mrf.mxu0  ;;  %v489_v25 = vpop.f32.mrf.mxu1 }
  0xdd   : > { %v533_v58 = vmul.f32 %v513_v45, %v394_v24  ;;  %v535_v59 = vmul.f32 %v515_v46, %v489_v25  ;;  %v705_v24 = vld [vmem:[%s2756_s4 + $0x4] sm:$0xf]  ;;  %v707_v46 = vld [vmem:[%s2756_s4 + $0xc] sm:$0xf] }
  0xde   : > { %v398_v26 = vpop.f32.mrf.mxu0  ;;  %v493_v27 = vpop.f32.mrf.mxu1 }
  0xdf   : > { %v536_v54 = vmul.f32 %v516_v41, %v398_v26  ;;  %v538_v55 = vmul.f32 %v518_v42, %v493_v27 }
  0xe0   : > { %v400_v28 = vpop.f32.mrf.mxu0  ;;  %v495_v29 = vpop.f32.mrf.mxu1 }
  0xe1   : > { %v537_v50 = vmul.f32 %v517_v36, %v400_v28  ;;  %v539_v51 = vmul.f32 %v519_v37, %v495_v29  ;;  %v706_v36 = vld [vmem:[%s2756_s4 + $0x8] sm:$0xf] }
  0xe2   : > { %v404_v31 = vpop.f32.mrf.mxu0  ;;  %v499_v32 = vpop.f32.mrf.mxu1 }
  0xe3   : > { %v540_v38 = vmul.f32 %v520_v30, %v404_v31  ;;  %v542_v47 = vmul.f32 %v522_v35, %v499_v32  ;;  %v704_v30 = vld [vmem:[%s2756_s4] sm:$0xf] }
  0xe4   : > { %v406_v39 = vpop.f32.mrf.mxu0  ;;  %v501_v40 = vpop.f32.mrf.mxu1 }
  0xe5   : > { %v541_v43 = vmul.f32 %v521_v33, %v406_v39  ;;  %v543_v44 = vmul.f32 %v523_v34, %v501_v40 }
  0xe7   : > { %2301 = vmatprep.subr.msk.mxu0 %vm549_vm2, %v541_v43  ;;  %2304 = vmatprep.subr.msk.mxu1 %vm549_vm2, %v543_v44 }
  0xe8   : > { %2302 = vmatpush1.msk.msra.mxu0 %vm549_vm2, %v540_v38  ;;  %2305 = vmatpush1.msk.msra.mxu1 %vm549_vm2, %v542_v47 }
  0xe9   : > { %586 = vmatprep.subr.mxu0 %v537_v50  ;;  %657 = vmatprep.subr.mxu1 %v539_v51 }
  0xea   : > { %587 = vmatpush1.msra.mxu0 %v536_v54  ;;  %658 = vmatpush1.msra.mxu1 %v538_v55  ;;  %v708_v54 = vld [vmem:[%s2756_s4 + $0x10] sm:$0xf] }
  0xeb   : > { %588 = vmatprep.subr.mxu0 %v533_v58  ;;  %659 = vmatprep.subr.mxu1 %v535_v59 }
  0xec   : > { %589 = vmatpush1.msra.mxu0 %v532_v62  ;;  %660 = vmatpush1.msra.mxu1 %v534_v63 }
  0xed   : > { %590 = vmatprep.subr.mxu0 %v529_v2  ;;  %661 = vmatprep.subr.mxu1 %v531_v3 }
  0xee   : > { %591 = vmatpush1.msra.mxu0 %v528_v4  ;;  %662 = vmatpush1.msra.mxu1 %v530_v5 }
  0xef   : > { %592 = vmatprep.subr.mxu0 %v525_v6  ;;  %663 = vmatprep.subr.mxu1 %v527_v7 }
  0xf0   : > { %593 = vmatpush1.msra.mxu0 %v524_v9  ;;  %664 = vmatpush1.msra.mxu1 %v526_v10 }
  0xf1   : > { %2303 = vmatmul.mubr.msk.f32.vlgmr.msra.gmra.mxu0 %vm545_vm3, %v544_v11  ;;  %2306 = vmatmul.mubr.msk.f32.vlgmr.msra.gmra.mxu1 %vm545_vm3, %v544_v11  ;;  %v710_v11 = vld [vmem:[%s2756_s4 + $0x18] sm:$0xf] }
  0xf2   : > { %2372 = vmatprep.subr.mxu1 %v2449_v8  ;;  %803 = vmatprep.mubr.f32.mxu0 %v2449_v8 }
  0xf3   : > { %2374 = vmatprep.mubr.msk.f32.mxu1 %vm2451_vm4, %v2449_v8 }
 0x1b1   : > { %v628_v12 = vpop.f32.mrf.mxu0  ;;  %v699_v13 = vpop.f32.mrf.mxu1 }
 0x1b2   : > { %721 = vrot.lane.b32.xlu0 %v699_v13, %s2450_s27  ;;  %717 = vrot.lane.b32.xlu1 %v628_v12, %s2450_s27 }
 0x1b3   : > { %v630_v14 = vpop.f32.mrf.mxu0  ;;  %v701_v15 = vpop.f32.mrf.mxu1 }
 0x1b6   : > { %884 = vrot.lane.b32.xlu0 %v699_v13, %s2452_s28  ;;  %882 = vrot.lane.b32.xlu1 %v630_v14, %s2452_s28 }
 0x1ba   : > { %880 = vrot.lane.b32.xlu0 %v628_v12, %s2452_s28  ;;  %723 = vrot.lane.b32.xlu1 %v701_v15, %s2450_s27 }
 0x1be   : > { %1046 = vrot.lane.b32.xlu0 %v699_v13, %s2453_s29  ;;  %1044 = vrot.lane.b32.xlu1 %v630_v14, %s2453_s29 }
 0x1c2   : > { %1042 = vrot.lane.b32.xlu0 %v628_v12, %s2453_s29  ;;  %886 = vrot.lane.b32.xlu1 %v701_v15, %s2452_s28 }
 0x1c6   : > { %1211 = vrot.lane.b32.xlu0 %v699_v13, %s2454_s30  ;;  %1209 = vrot.lane.b32.xlu1 %v630_v14, %s2454_s30 }
 0x1ca   : > { %1207 = vrot.lane.b32.xlu0 %v628_v12, %s2454_s30  ;;  %1048 = vrot.lane.b32.xlu1 %v701_v15, %s2453_s29 }
 0x1ce   : > { %1376 = vrot.lane.b32.xlu0 %v699_v13, %s2455_s7  ;;  %1374 = vrot.lane.b32.xlu1 %v630_v14, %s2455_s7 }
 0x1d2   : > { %1213 = vrot.lane.b32.xlu1 %v701_v15, %s2454_s30  ;;  %719 = vrot.lane.b32.xlu0 %v630_v14, %s2450_s27 }
 0x1d6   : > { %1539 = vrot.lane.b32.xlu1 %v630_v14, %s2456_s8  ;;  %1372 = vrot.lane.b32.xlu0 %v628_v12, %s2455_s7 }
 0x1da   : > { %1378 = vrot.lane.b32.xlu1 %v701_v15, %s2455_s7  ;;  %1541 = vrot.lane.b32.xlu0 %v699_v13, %s2456_s8 }
 0x1de   : > { %1704 = vrot.lane.b32.xlu1 %v630_v14, %s2457_s9  ;;  %1537 = vrot.lane.b32.xlu0 %v628_v12, %s2456_s8 }
 0x1e2   : > { %1543 = vrot.lane.b32.xlu1 %v701_v15, %s2456_s8  ;;  %1706 = vrot.lane.b32.xlu0 %v699_v13, %s2457_s9 }
 0x1e6   : > { %1869 = vrot.lane.b32.xlu1 %v630_v14, %s2458_s10  ;;  %1702 = vrot.lane.b32.xlu0 %v628_v12, %s2457_s9 }
 0x1ea   : > { %1708 = vrot.lane.b32.xlu1 %v701_v15, %s2457_s9  ;;  %1871 = vrot.lane.b32.xlu0 %v699_v13, %s2458_s10 }
 0x1ee   : > { %2034 = vrot.lane.b32.xlu1 %v630_v14, %s2460_s11  ;;  %1867 = vrot.lane.b32.xlu0 %v628_v12, %s2458_s10 }
 0x1f2   : > { %1873 = vrot.lane.b32.xlu1 %v701_v15, %s2458_s10  ;;  %2036 = vrot.lane.b32.xlu0 %v699_v13, %s2460_s11  ;;  %s2419_s10 = smul.u32 12, %s2760_s22 }
 0x1f4   : > { %s271_s13 = scalar_lea.vmem %s2758_s6, %s2419_s10 }
 0x1f6   : > { %2038 = vrot.lane.b32.xlu1 %v701_v15, %s2460_s11  ;;  %2032 = vrot.lane.b32.xlu0 %v628_v12, %s2460_s11 }
 0x1fa   : > { %2200 = vperm.xlu0 %2440, %v2197_v17   ;;  %v711_v17 = vld [vmem:[%s2756_s4 + $0x1c] sm:$0xf] }
 0x224   : > { %v722_v18 = vpop.permute.xlu0 %721  ;;  %v718_v19 = vpop.permute.xlu1 %717 }
 0x228   : > { %v885_v20 = vpop.permute.xlu0 %884  ;;  %v883_v21 = vpop.permute.xlu1 %882 }
 0x229   : > { %v890_v45 = vsel %vm888_vm7, %v883_v21, %v885_v20 }
 0x22c   : > { %v881_v22 = vpop.permute.xlu0 %880  ;;  %v724_v23 = vpop.permute.xlu1 %723 }
 0x22d   : > { %v728_v25 = vsel %vm725_vm5, %v722_v18, %v724_v23  ;;  %v889_v47 = vsel %vm888_vm7, %v881_v22, %v883_v21 }
 0x22e   : > { %2373 = vmatpush3.msk.msra.mxu1 %vm549_vm2, %v728_v25 }
 0x22f   : > { %2377 = vmatprep.subr.mxu1 %v2449_v8  ;;  %2375 = vmatmul.mubr.msk.f32.vlgmr.msra.gmra.mxu1 %vm729_vm6, %v705_v24 }
 0x230   : > { %v1047_v26 = vpop.permute.xlu0 %1046  ;;  %v1045_v27 = vpop.permute.xlu1 %1044  ;;  %2379 = vmatprep.mubr.msk.f32.mxu1 %vm2451_vm4, %v2449_v8 }
 0x231   : > { %v1052_v50 = vsel %vm1050_vm8, %v1045_v27, %v1047_v26 }
 0x234   : > { %v1043_v28 = vpop.permute.xlu0 %1042  ;;  %v887_v29 = vpop.permute.xlu1 %886 }
 0x235   : > { %v891_v31 = vsel %vm888_vm7, %v885_v20, %v887_v29  ;;  %v1051_v51 = vsel %vm1050_vm8, %v1043_v28, %v1045_v27 }
 0x236   : > { %2378 = vmatpush3.msk.msra.mxu1 %vm549_vm2, %v891_v31 }
 0x237   : > { %2382 = vmatprep.subr.mxu1 %v2449_v8  ;;  %2380 = vmatmul.mubr.msk.f32.vlgmr.msra.gmra.mxu1 %vm729_vm6, %v704_v30 }
 0x238   : > { %v1212_v32 = vpop.permute.xlu0 %1211  ;;  %v1210_v33 = vpop.permute.xlu1 %1209  ;;  %2384 = vmatprep.mubr.msk.f32.mxu1 %vm2451_vm4, %v2449_v8 }
 0x239   : > { %v1217_v55 = vsel %vm1215_vm9, %v1210_v33, %v1212_v32 }
 0x23c   : > { %v1208_v34 = vpop.permute.xlu0 %1207  ;;  %v1049_v35 = vpop.permute.xlu1 %1048 }
 0x23d   : > { %v1053_v37 = vsel %vm1050_vm8, %v1047_v26, %v1049_v35  ;;  %v1216_v57 = vsel %vm1215_vm9, %v1208_v34, %v1210_v33 }
 0x23e   : > { %2383 = vmatpush3.msk.msra.mxu1 %vm549_vm2, %v1053_v37 }
 0x23f   : > { %2387 = vmatprep.subr.mxu1 %v2449_v8  ;;  %2385 = vmatmul.mubr.msk.f32.vlgmr.msra.gmra.mxu1 %vm729_vm6, %v706_v36 }
 0x240   : > { %v1377_v38 = vpop.permute.xlu0 %1376  ;;  %v1375_v39 = vpop.permute.xlu1 %1374  ;;  %2389 = vmatprep.mubr.msk.f32.mxu1 %vm2451_vm4, %v2449_v8 }
 0x241   : > { %v1382_v60 = vsel %vm1380_vm10, %v1375_v39, %v1377_v38 }
 0x244   : > { %v1214_v40 = vpop.permute.xlu1 %1213  ;;  %v720_v41 = vpop.permute.xlu0 %719 }
 0x245   : > { %v1218_v42 = vsel %vm1215_vm9, %v1212_v32, %v1214_v40  ;;  %v726_v43 = vsel %vm725_vm5, %v718_v19, %v720_v41  ;;  %v727_v44 = vsel %vm725_vm5, %v720_v41, %v722_v18 }
 0x246   : > { %2307 = vmatprep.subr.msk.mxu0 %vm549_vm2, %v727_v44  ;;  %2388 = vmatpush3.msk.msra.mxu1 %vm549_vm2, %v1218_v42 }
 0x247   : > { %2308 = vmatpush1.msk.msra.mxu0 %vm549_vm2, %v726_v43  ;;  %2392 = vmatprep.subr.mxu1 %v2449_v8 }
 0x248   : > { %v1540_v48 = vpop.permute.xlu1 %1539  ;;  %2309 = vmatmul.mubr.msk.f32.vlgmr.msra.gmra.mxu0 %vm729_vm6, %v705_v24  ;;  %2312 = vmatprep.subr.msk.mxu0 %vm549_vm2, %v890_v45  ;;  %v1373_v49 = vpop.permute.xlu0 %1372  ;;  %v712_v24 = vld [vmem:[%s2756_s4 + $0x20] sm:$0xf] }
 0x249   : > { %2313 = vmatpush1.msk.msra.mxu0 %vm549_vm2, %v889_v47  ;;  %965 = vmatprep.mubr.f32.mxu0 %v2449_v8  ;;  %v1381_v61 = vsel %vm1380_vm10, %v1373_v49, %v1375_v39 }
 0x24a   : > { %2317 = vmatprep.subr.msk.mxu0 %vm549_vm2, %v1052_v50  ;;  %2390 = vmatmul.mubr.msk.f32.vlgmr.msra.gmra.mxu1 %vm729_vm6, %v707_v46 }
 0x24b   : > { %2394 = vmatprep.mubr.msk.f32.mxu1 %vm2451_vm4, %v2449_v8 }
 0x24c   : > { %v1379_v52 = vpop.permute.xlu1 %1378  ;;  %2314 = vmatmul.mubr.msk.f32.vlgmr.msra.gmra.mxu0 %vm729_vm6, %v704_v30  ;;  %v1542_v53 = vpop.permute.xlu0 %1541 }
 0x24d   : > { %v1383_v56 = vsel %vm1380_vm10, %v1377_v38, %v1379_v52  ;;  %2318 = vmatpush1.msk.msra.mxu0 %vm549_vm2, %v1051_v51  ;;  %1127 = vmatprep.mubr.f32.mxu0 %v2449_v8  ;;  %v1547_v1 = vsel %vm1545_vm11, %v1540_v48, %v1542_v53 }
 0x24e   : > { %2322 = vmatprep.subr.msk.mxu0 %vm549_vm2, %v1217_v55  ;;  %2393 = vmatpush3.msk.msra.mxu1 %vm549_vm2, %v1383_v56 }
 0x24f   : > { %2397 = vmatprep.subr.mxu1 %v2449_v8  ;;  %2395 = vmatmul.mubr.msk.f32.vlgmr.msra.gmra.mxu1 %vm729_vm6, %v708_v54 }
 0x250   : > { %v1705_v58 = vpop.permute.xlu1 %1704  ;;  %2319 = vmatmul.mubr.msk.f32.vlgmr.msra.gmra.mxu0 %vm729_vm6, %v706_v36  ;;  %v1538_v59 = vpop.permute.xlu0 %1537  ;;  %2399 = vmatprep.mubr.msk.f32.mxu1 %vm2451_vm4, %v2449_v8 }
 0x251   : > { %2323 = vmatpush1.msk.msra.mxu0 %vm549_vm2, %v1216_v57  ;;  %1292 = vmatprep.mubr.f32.mxu0 %v2449_v8  ;;  %v1546_v3 = vsel %vm1545_vm11, %v1538_v59, %v1540_v48 }
 0x252   : > { %2327 = vmatprep.subr.msk.mxu0 %vm549_vm2, %v1382_v60 }
 0x254   : > { %v1544_v62 = vpop.permute.xlu1 %1543  ;;  %2324 = vmatmul.mubr.msk.f32.vlgmr.msra.gmra.mxu0 %vm729_vm6, %v707_v46  ;;  %v1707_v63 = vpop.permute.xlu0 %1706 }
 0x255   : > { %v1548_v2 = vsel %vm1545_vm11, %v1542_v53, %v1544_v62  ;;  %2328 = vmatpush1.msk.msra.mxu0 %vm549_vm2, %v1381_v61  ;;  %1457 = vmatprep.mubr.f32.mxu0 %v2449_v8  ;;  %v1712_v6 = vsel %vm1710_vm12, %v1705_v58, %v1707_v63 }
 0x256   : > { %2332 = vmatprep.subr.msk.mxu0 %vm549_vm2, %v1547_v1  ;;  %2398 = vmatpush3.msk.msra.mxu1 %vm549_vm2, %v1548_v2 }
 0x257   : > { %2402 = vmatprep.subr.mxu1 %v2449_v8  ;;  %2400 = vmatmul.mubr.msk.f32.vlgmr.msra.gmra.mxu1 %vm729_vm6, %v709_v0 }
 0x258   : > { %v1870_v4 = vpop.permute.xlu1 %1869  ;;  %2329 = vmatmul.mubr.msk.f32.vlgmr.msra.gmra.mxu0 %vm729_vm6, %v708_v54  ;;  %v1703_v5 = vpop.permute.xlu0 %1702  ;;  %2404 = vmatprep.mubr.msk.f32.mxu1 %vm2451_vm4, %v2449_v8 }
 0x259   : > { %2333 = vmatpush1.msk.msra.mxu0 %vm549_vm2, %v1546_v3  ;;  %1622 = vmatprep.mubr.f32.mxu0 %v2449_v8  ;;  %v1711_v7 = vsel %vm1710_vm12, %v1703_v5, %v1705_v58 }
 0x25a   : > { %2337 = vmatprep.subr.msk.mxu0 %vm549_vm2, %v1712_v6 }
 0x25c   : > { %v1709_v9 = vpop.permute.xlu1 %1708  ;;  %2334 = vmatmul.mubr.msk.f32.vlgmr.msra.gmra.mxu0 %vm729_vm6, %v709_v0  ;;  %v1872_v10 = vpop.permute.xlu0 %1871 }
 0x25d   : > { %v1713_v12 = vsel %vm1710_vm12, %v1707_v63, %v1709_v9  ;;  %2338 = vmatpush1.msk.msra.mxu0 %vm549_vm2, %v1711_v7  ;;  %v1877_v13 = vsel %vm1875_vm13, %v1870_v4, %v1872_v10  ;;  %1787 = vmatprep.mubr.f32.mxu0 %v2449_v8 }
 0x25e   : > { %2403 = vmatpush3.msk.msra.mxu1 %vm549_vm2, %v1713_v12  ;;  %2342 = vmatprep.subr.msk.mxu0 %vm549_vm2, %v1877_v13 }
 0x25f   : > { %2405 = vmatmul.mubr.msk.f32.vlgmr.msra.gmra.mxu1 %vm729_vm6, %v710_v11  ;;  %2407 = vmatprep.subr.mxu1 %v2449_v8 }
 0x260   : > { %v2035_v14 = vpop.permute.xlu1 %2034  ;;  %2339 = vmatmul.mubr.msk.f32.vlgmr.msra.gmra.mxu0 %vm729_vm6, %v710_v11  ;;  %v1868_v15 = vpop.permute.xlu0 %1867  ;;  %2409 = vmatprep.mubr.msk.f32.mxu1 %vm2451_vm4, %v2449_v8 }
 0x261   : > { %v1876_v16 = vsel %vm1875_vm13, %v1868_v15, %v1870_v4  ;;  %1952 = vmatprep.mubr.f32.mxu0 %v2449_v8 }
 0x262   : > { %2343 = vmatpush1.msk.msra.mxu0 %vm549_vm2, %v1876_v16 }
 0x264   : > { %v1874_v18 = vpop.permute.xlu1 %1873  ;;  %2344 = vmatmul.mubr.msk.f32.vlgmr.msra.gmra.mxu0 %vm729_vm6, %v711_v17  ;;  %v2037_v19 = vpop.permute.xlu0 %2036 }
 0x265   : > { %v1878_v20 = vsel %vm1875_vm13, %v1872_v10, %v1874_v18  ;;  %v2042_v21 = vsel %vm2040_vm14, %v2035_v14, %v2037_v19  ;;  %2117 = vmatprep.mubr.f32.mxu0 %v2449_v8 }
 0x266   : > { %2408 = vmatpush3.msk.msra.mxu1 %vm549_vm2, %v1878_v20  ;;  %2347 = vmatprep.subr.msk.mxu0 %vm549_vm2, %v2042_v21 }
 0x267   : > { %2410 = vmatmul.mubr.msk.f32.vlgmr.msra.gmra.mxu1 %vm729_vm6, %v711_v17  ;;  %2412 = vmatprep.subr.mxu1 %v2449_v8 }
 0x268   : > { %v2039_v22 = vpop.permute.xlu1 %2038  ;;  %v2033_v23 = vpop.permute.xlu0 %2032  ;;  %2414 = vmatprep.mubr.msk.f32.mxu1 %vm2451_vm4, %v2449_v8 }
 0x269   : > { %v2043_v25 = vsel %vm2040_vm14, %v2037_v19, %v2039_v22  ;;  %v2041_v26 = vsel %vm2040_vm14, %v2033_v23, %v2035_v14 }
 0x26a   : > { %2348 = vmatpush1.msk.msra.mxu0 %vm549_vm2, %v2041_v26  ;;  %2413 = vmatpush3.msk.msra.mxu1 %vm549_vm2, %v2043_v25 }
 0x26b   : > { %2349 = vmatmul.mubr.msk.f32.vlgmr.msra.gmra.mxu0 %vm729_vm6, %v712_v24  ;;  %2415 = vmatmul.mubr.msk.f32.vlgmr.msra.gmra.mxu1 %vm729_vm6, %v712_v24 }
 0x275   : > { %v2201_v15 = vpop.permute.xlu0 %2200 }
 0x2ef   : > { %v876_v27 = vpop.f32.mrf.mxu1 }
 0x2f1   : > { %v2376_v28 = vpop.f32.mrf.mxu1 }
 0x2f7   : > { %v1038_v29 = vpop.f32.mrf.mxu1 }
 0x2f8   : > { %v1039_v43 = vadd.f32 %v1038_v29, %v876_v27 }
 0x2f9   : > { %v2381_v8 = vpop.f32.mrf.mxu1 }
 0x2ff   : > { %v1200_v30 = vpop.f32.mrf.mxu1 }
 0x300   : > { %v1206_v48 = vadd.f32 %v1200_v30, %v1039_v43 }
 0x301   : > { %v2386_v31 = vpop.f32.mrf.mxu1 }
 0x308   : > { %v805_v32 = vpop.f32.mrf.mxu0 }
 0x30a   : > { %v807_v33 = vpop.f32.mrf.mxu0  ;;  %v1365_v34 = vpop.f32.mrf.mxu1 }
 0x30b   : > { %v1371_v52 = vadd.f32 %v1365_v34, %v1206_v48 }
 0x30c   : > { %v967_v35 = vpop.f32.mrf.mxu0  ;;  %v2391_v36 = vpop.f32.mrf.mxu1 }
 0x30d   : > { %v968_v51 = vadd.f32 %v967_v35, %v805_v32 }
 0x30e   : > { %v969_v37 = vpop.f32.mrf.mxu0 }
 0x30f   : > { %v1530_v38 = vpop.f32.mrf.mxu1  ;;  %v970_v55 = vadd.f32 %v969_v37, %v807_v33 }
 0x310   : > { %v1129_v39 = vpop.f32.mrf.mxu0  ;;  %v1536_v61 = vadd.f32 %v1530_v38, %v1371_v52 }
 0x311   : > { %v2396_v40 = vpop.f32.mrf.mxu1  ;;  %v1204_v56 = vadd.f32 %v1129_v39, %v968_v51 }
 0x312   : > { %v1131_v41 = vpop.f32.mrf.mxu0 }
 0x313   : > { %v1205_v59 = vadd.f32 %v1131_v41, %v970_v55 }
 0x314   : > { %v1294_v42 = vpop.f32.mrf.mxu0 }
 0x315   : > { %v1369_v60 = vadd.f32 %v1294_v42, %v1204_v56 }
 0x316   : > { %v1296_v44 = vpop.f32.mrf.mxu0 }
 0x317   : > { %v1695_v45 = vpop.f32.mrf.mxu1  ;;  %v1370_v63 = vadd.f32 %v1296_v44, %v1205_v59 }
 0x318   : > { %v1459_v46 = vpop.f32.mrf.mxu0  ;;  %v1701_v4 = vadd.f32 %v1695_v45, %v1536_v61 }
 0x319   : > { %v2401_v47 = vpop.f32.mrf.mxu1  ;;  %v1534_v0 = vadd.f32 %v1459_v46, %v1369_v60 }
 0x31a   : > { %v1461_v49 = vpop.f32.mrf.mxu0 }
 0x31b   : > { %v1535_v2 = vadd.f32 %v1461_v49, %v1370_v63 }
 0x31c   : > { %v1624_v50 = vpop.f32.mrf.mxu0 }
 0x31d   : > { %v1699_v3 = vadd.f32 %v1624_v50, %v1534_v0 }
 0x31e   : > { %v1626_v53 = vpop.f32.mrf.mxu0 }
 0x31f   : > { %v1860_v54 = vpop.f32.mrf.mxu1  ;;  %v1700_v6 = vadd.f32 %v1626_v53, %v1535_v2 }
 0x320   : > { %v1789_v57 = vpop.f32.mrf.mxu0  ;;  %v1866_v9 = vadd.f32 %v1860_v54, %v1701_v4 }
 0x321   : > { %v2406_v58 = vpop.f32.mrf.mxu1  ;;  %v1864_v7 = vadd.f32 %v1789_v57, %v1699_v3 }
 0x322   : > { %v1791_v62 = vpop.f32.mrf.mxu0 }
 0x323   : > { %v1865_v12 = vadd.f32 %v1791_v62, %v1700_v6 }
 0x324   : > { %v1954_v1 = vpop.f32.mrf.mxu0 }
 0x325   : > { %v2029_v13 = vadd.f32 %v1954_v1, %v1864_v7 }
 0x326   : > { %v1956_v10 = vpop.f32.mrf.mxu0 }
 0x327   : > { %v2025_v5 = vpop.f32.mrf.mxu1  ;;  %v2030_v18 = vadd.f32 %v1956_v10, %v1865_v12 }
 0x328   : > { %v2031_v14 = vadd.f32 %v2025_v5, %v1866_v9 }
 0x329   : > { %v2411_v11 = vpop.f32.mrf.mxu1 }
 0x32b   : > { %v2119_v16 = vpop.f32.mrf.mxu0  ;;  %v2190_v17 = vpop.f32.mrf.mxu1 }
 0x32c   : > { %v2194_v19 = vadd.f32 %v2119_v16, %v2029_v13  ;;  %v2196_v20 = vadd.f32 %v2190_v17, %v2031_v14 }
 0x32d   : > { %v2121_v21 = vpop.f32.mrf.mxu0  ;;  %v2416_v22 = vpop.f32.mrf.mxu1 }
 0x32e   : > { %v2195_v23 = vadd.f32 %v2121_v21, %v2030_v18  ;;  %v2205_v24 = vadd.f32 %v2201_v15, %v2196_v20  ;;  %v2203_v25 = vadd.f32 %v2201_v15, %v2194_v19 }
 0x330   : > { %v2204_v26 = vadd.f32 %v2201_v15, %v2195_v23  ;;  %2211 = vst [vmem:[%s271_s13 + $0x8] sm:$0xf] %v2205_v24 }
 0x332   : > { %v2208_v27 = vcombine.low %v2203_v25, %v2204_v26 }
 0x334   : > { %2210 = vst [vmem:[%s271_s13] sm:$0xff] %v2208_v27 }
 0x335 PF: > { %s16_s21 = sadd.s32 1, %s2447_s21  }
 0x336   : > { %p13_p4 = scmp.ge.s32.totalorder %s16_s21, 4  }
 0x338   :  { %15 = sbr.rel (!%p13_p4) target bundleno = 1 (0x1), region = 77 }

</bundles_post_ra>
